<compile_context>
chip_gen: v7x
topology: tpu7x:2x2x1
jax: 0.10.0
libtpu: 0.0.40
codegen_flags: <defaults>
</compile_context>

<pallas_src>
import functools

import jax
import jax.numpy as jnp
from jax.experimental import pallas as pl
from jax.experimental.pallas import tpu as pltpu

CURVATURE = 1.0  # cfg.MODEL.CURVATURE is not available; fixed in-script.


def _round_up(x, m):
    return (x + m - 1) // m * m


# ----------------------------------------------------------------------------
# Kernel 1: matmul + affine (folded BN / bias) + optional ReLU.
# Full K per step (no scratch), A cast to bf16 in-kernel, lane-dense output.
# ----------------------------------------------------------------------------
def _mm_affine_kernel(a_ref, b_ref, s_ref, t_ref, o_ref, *, relu):
    y = jnp.dot(a_ref[...].astype(jnp.bfloat16), b_ref[...],
                preferred_element_type=jnp.float32)
    y = y * s_ref[...] + t_ref[...]
    if relu:
        y = jnp.maximum(y, 0.0)
    o_ref[...] = y


def matmul_affine(a, b, scale, bias, relu):
    """(M,K) @ (K,N) * scale[N] + bias[N], optional ReLU.

    A stays f32 in HBM (cast to bf16 inside the kernel), B is bf16.
    N is padded up to a multiple of 128 so stores are lane-dense (unmasked
    vst); the padding is sliced off outside.
    """
    M, K = a.shape
    K2, N = b.shape
    assert K == K2
    tm = min(256, _round_up(M, 8))
    Mp = _round_up(M, tm)
    Np = _round_up(N, 128)
    tn = 512
    while Np % tn:
        tn //= 2
    a_p = a.astype(jnp.float32)
    if Mp != M:
        a_p = jnp.pad(a_p, ((0, Mp - M), (0, 0)))
    b_p = b.astype(jnp.bfloat16)
    s_p = scale.reshape(1, -1).astype(jnp.float32)
    t_p = bias.reshape(1, -1).astype(jnp.float32)
    if Np != N:
        b_p = jnp.pad(b_p, ((0, 0), (0, Np - N)))
        s_p = jnp.pad(s_p, ((0, 0), (0, Np - N)))
        t_p = jnp.pad(t_p, ((0, 0), (0, Np - N)))
    out = pl.pallas_call(
        functools.partial(_mm_affine_kernel, relu=relu),
        out_shape=jax.ShapeDtypeStruct((Mp, Np), jnp.float32),
        grid=(Mp // tm, Np // tn),
        in_specs=[
            pl.BlockSpec((tm, K), lambda i, j: (i, 0)),
            pl.BlockSpec((K, tn), lambda i, j: (0, j)),
            pl.BlockSpec((1, tn), lambda i, j: (0, j)),
            pl.BlockSpec((1, tn), lambda i, j: (0, j)),
        ],
        out_specs=pl.BlockSpec((tm, tn), lambda i, j: (i, j)),
        compiler_params=pltpu.CompilerParams(
            dimension_semantics=("parallel", "parallel")),
    )(a_p, b_p, s_p, t_p)
    if (Mp, Np) != (M, N):
        out = out[:M, :N]
    return out


def conv1x1_affine(x_nhwc, w, scale, bias, relu):
    N, H, W, C = x_nhwc.shape
    y = matmul_affine(x_nhwc.reshape(-1, C), w, scale, bias, relu)
    return y.reshape(N, H, W, -1)


# ----------------------------------------------------------------------------
# Kernel 2: fused depthwise-separable block
#   3x3 dilated depthwise + BN + ReLU  ->  1x1 pointwise + BN + ReLU
# Row-chunked inner loop; optional halo'd spatial row-block grid axis.
# ----------------------------------------------------------------------------
def _sepconv_kernel(xp_ref, dww_ref, dws_ref, dwt_ref,
                    pww_ref, pws_ref, pwt_ref, o_ref, *, Hb, W, dil, rc):
    C = dww_ref.shape[1]
    # Depthwise MAC kept in f32 so the same path is safe on v5e (no bf16 VPU).
    for r0 in range(0, Hb, rc):
        rows = min(rc, Hb - r0)
        acc = jnp.zeros((rows, W, C), jnp.float32)
        for kh in range(3):
            for kw in range(3):
                patch = xp_ref[0, r0 + kh * dil:r0 + kh * dil + rows,
                               kw * dil:kw * dil + W, :].astype(jnp.float32)
                acc = acc + patch * dww_ref[kh * 3 + kw:kh * 3 + kw + 1, :]
        y = jnp.maximum(acc * dws_ref[...] + dwt_ref[...], 0.0)
        y2 = y.reshape(rows * W, C).astype(jnp.bfloat16)          # MXU operands
        z = jnp.dot(y2, pww_ref[...], preferred_element_type=jnp.float32)
        z = jnp.maximum(z * pws_ref[...] + pwt_ref[...], 0.0)
        o_ref[0, r0 * W:r0 * W + rows * W, :] = z


def sepconv_fused(x_nhwc, p):
    N, H, W, C = x_nhwc.shape
    dil = int(p['dilation'])
    pad = dil
    xp = jnp.pad(x_nhwc.astype(jnp.bfloat16),
                 ((0, 0), (pad, pad), (pad, pad), (0, 0)))
    Wp = W + 2 * pad
    Cout = p['pw_w'].shape[1]

    # Spatial row-block (divisor of H) chosen so the halo'd bf16 input block
    # fits a conservative VMEM budget (v7x has only 64 MiB physical VMEM).
    budget = 4 << 20
    rb = H
    for cand in range(H, 0, -1):
        if H % cand == 0 and (cand + 2 * pad) * Wp * C * 2 <= budget:
            rb = cand
            break
    nb = H // rb
    hb = rb + 2 * pad
    if nb == 1:
        xb = xp
    else:
        # TODO(synk): halo'd row blocks are materialized on host (overlap is
        # 2*pad rows per block); acceptable VMEM-safety trade at large sizes.
        xb = jnp.stack([xp[:, i * rb:i * rb + hb] for i in range(nb)],
                       axis=1).reshape(N * nb, hb, Wp, C)

    rc = max(1, min(rb, max(1, 128 // W)))     # inner row chunk (~128 MXU rows)

    out = pl.pallas_call(
        functools.partial(_sepconv_kernel, Hb=rb, W=W, dil=dil, rc=rc),
        out_shape=jax.ShapeDtypeStruct((N * nb, rb * W, Cout), jnp.float32),
        grid=(N * nb,),
        in_specs=[
            pl.BlockSpec((1, hb, Wp, C), lambda g: (g, 0, 0, 0)),
            pl.BlockSpec((9, C), lambda g: (0, 0)),
            pl.BlockSpec((1, C), lambda g: (0, 0)),
            pl.BlockSpec((1, C), lambda g: (0, 0)),
            pl.BlockSpec((C, Cout), lambda g: (0, 0)),
            pl.BlockSpec((1, Cout), lambda g: (0, 0)),
            pl.BlockSpec((1, Cout), lambda g: (0, 0)),
        ],
        out_specs=pl.BlockSpec((1, rb * W, Cout), lambda g: (g, 0, 0)),
        compiler_params=pltpu.CompilerParams(dimension_semantics=("parallel",)),
    )(xb, p['dw_w'], p['dw_scale'].reshape(1, -1), p['dw_bias'].reshape(1, -1),
      p['pw_w'].astype(jnp.bfloat16),
      p['pw_scale'].reshape(1, -1), p['pw_bias'].reshape(1, -1))
    return out.reshape(N, H, W, Cout)


# ----------------------------------------------------------------------------
# Kernel 3: 3x3 conv (bottleneck) + BN + ReLU, resident weights.
# Single K chunk; weight BlockSpec index is constant across the grid so the
# ~13.5 MiB bf16 weights are DMAed once and reused for every batch element.
# ----------------------------------------------------------------------------
def _conv3x3_kernel(xp_ref, w_ref, s_ref, t_ref, o_ref, *, H, W):
    HW = H * W
    C = xp_ref.shape[3]
    acc = None
    for kh in range(3):
        for kw in range(3):
            patch = xp_ref[0, kh:kh + H, kw:kw + W, :].reshape(HW, C)
            z = jnp.dot(patch, w_ref[kh * 3 + kw],
                        preferred_element_type=jnp.float32)
            acc = z if acc is None else acc + z
    o_ref[0] = jnp.maximum(acc * s_ref[...] + t_ref[...], 0.0)


def conv3x3_bn_relu(x_nhwc, p):
    N, H, W, C = x_nhwc.shape
    w = p['w'].astype(jnp.bfloat16)              # (9, Cin, Cout)
    Cout = w.shape[2]
    # bf16 BEFORE the pad: halves input DMA + double-buffered VMEM footprint.
    xp = jnp.pad(x_nhwc.astype(jnp.bfloat16), ((0, 0), (1, 1), (1, 1), (0, 0)))
    Hp, Wp = H + 2, W + 2
    # TODO(synk): at very large 'out' resolutions a spatial row-block axis
    # (as in sepconv_fused) would be needed to keep the input block in VMEM.
    out = pl.pallas_call(
        functools.partial(_conv3x3_kernel, H=H, W=W),
        out_shape=jax.ShapeDtypeStruct((N, H * W, Cout), jnp.float32),
        grid=(N,),
        in_specs=[
            pl.BlockSpec((1, Hp, Wp, C), lambda n: (n, 0, 0, 0)),
            pl.BlockSpec((9, C, Cout), lambda n: (0, 0, 0)),   # resident weights
            pl.BlockSpec((1, Cout), lambda n: (0, 0)),
            pl.BlockSpec((1, Cout), lambda n: (0, 0)),
        ],
        out_specs=pl.BlockSpec((1, H * W, Cout), lambda n: (n, 0, 0)),
        compiler_params=pltpu.CompilerParams(
            dimension_semantics=("parallel",),
            vmem_limit_bytes=48 * 1024 * 1024),   # resident dbl-buffered weights
    )(xp, w, p['scale'].reshape(1, -1), p['bias'].reshape(1, -1))
    return out.reshape(N, H, W, Cout)


# ----------------------------------------------------------------------------
# Kernel 4: fused tail
#   conv_reduce -> wn_mlp (Linear+BN1d+ReLU, Linear, spatial mean, clamp)
#   -> per-channel spatial F.normalize -> expmap0 -> HyperMLR logits.
# Both outputs are lane-dense 128-wide slabs (sliced outside).
# ----------------------------------------------------------------------------
def _tail_kernel(x_ref, wr_ref, br_ref, w1_ref, s1_ref, t1_ref, w2_ref, t2_ref,
                 paw_ref, psq_ref, pa_ref, an_ref, o_log_ref, o_hyp_ref,
                 *, c, hfr, KP, Cr, CP):
    x2 = x_ref[0].astype(jnp.bfloat16)                               # (HW, Cf)
    d = jnp.dot(x2, wr_ref[...], preferred_element_type=jnp.float32) + br_ref[...]

    if hfr:
        h = jnp.maximum(jnp.dot(d.astype(jnp.bfloat16), w1_ref[...],
                                preferred_element_type=jnp.float32)
                        * s1_ref[...] + t1_ref[...], 0.0)
        nw = jnp.dot(h.astype(jnp.bfloat16), w2_ref[...],
                     preferred_element_type=jnp.float32) + t2_ref[...]
        nw = jnp.maximum(jnp.mean(nw, axis=0, keepdims=True), 1e-5)   # (1, C)
        sp = jnp.sqrt(jnp.sum(d * d, axis=0, keepdims=True))          # spatial L2
        d = d / jnp.maximum(sp, 1e-12) * nw

    # Poincare exp map at the origin (expmap0, channels on last dim)
    sq = jnp.sum(d * d, axis=-1, keepdims=True)
    nrm = jnp.sqrt(jnp.maximum(sq, 1e-15))
    sc = c ** 0.5
    dh = (jnp.tanh(sc * nrm) / (sc * nrm)) * d
    HW = dh.shape[0]
    if CP > Cr:                                    # lane-dense hyperbolic output
        o_hyp_ref[0] = jnp.concatenate(
            [dh, jnp.zeros((HW, CP - Cr), jnp.float32)], axis=-1)
    else:
        o_hyp_ref[0] = dh

    # Hyperbolic MLR:
    # logit_k = 2/sqrt(c)*||a_k||*asinh(2 sqrt(c) <m,a_k> / ((1-c||m||^2)||a_k||)),
    # m = (-p_k) mobius_add_c x ; inner products come from one concatenated dot.
    xx = jnp.sum(dh * dh, axis=-1, keepdims=True)
    both = jnp.dot(dh, paw_ref[...], preferred_element_type=jnp.float32)
    px = both[:, :KP]
    xa = both[:, KP:]
    psq, pa, an = psq_ref[...], pa_ref[...], an_ref[...]
    A = 1.0 - 2.0 * c * px + c * xx
    Bc = 1.0 - c * psq
    D = 1.0 - 2.0 * c * px + (c * c) * psq * xx
    D = jnp.where(D >= 0.0, jnp.maximum(D, 1e-12), jnp.minimum(D, -1e-12))
    m_dot_a = (-A * pa + Bc * xa) / D
    m_sq = (A * A * psq - 2.0 * A * Bc * px + Bc * Bc * xx) / (D * D)
    denom = jnp.maximum((1.0 - c * m_sq) * an, 1e-12)
    z = 2.0 * sc * m_dot_a / denom
    abs_z = jnp.abs(z)
    az = jnp.log(abs_z + jnp.sqrt(abs_z * abs_z + 1.0))               # sign-safe asinh
    az = jnp.where(z >= 0.0, az, -az)
    o_log_ref[0] = (2.0 / sc) * an * az


def tail_fused(feats_nhwc, cr, wn, hm, c):
    N, Hl, Wl, Cf = feats_nhwc.shape
    HW = Hl * Wl
    Cr = cr['w'].shape[1]
    CP = _round_up(Cr, 128)
    KP = hm['psq'].shape[1]
    hfr = wn is not None
    if not hfr:
        zmat = jnp.zeros((Cr, Cr), jnp.float32)
        zvec = jnp.zeros((Cr,), jnp.float32)
        wn = dict(w1=zmat, s1=zvec, t1=zvec, w2=zmat, t2=zvec)
    x = feats_nhwc.reshape(N, HW, Cf)
    vec = lambda v: v.reshape(1, -1)
    # TODO(synk): at large decoder resolutions this per-image block should be
    # split spatially with a two-pass spatial-norm/mean reduction.
    logits, dhyp = pl.pallas_call(
        functools.partial(_tail_kernel, c=c, hfr=hfr, KP=KP, Cr=Cr, CP=CP),
        out_shape=[jax.ShapeDtypeStruct((N, HW, KP), jnp.float32),
                   jax.ShapeDtypeStruct((N, HW, CP), jnp.float32)],
        grid=(N,),
        in_specs=[
            pl.BlockSpec((1, HW, Cf), lambda n: (n, 0, 0)),
            pl.BlockSpec((Cf, Cr), lambda n: (0, 0)),
            pl.BlockSpec((1, Cr), lambda n: (0, 0)),
            pl.BlockSpec((Cr, Cr), lambda n: (0, 0)),
            pl.BlockSpec((1, Cr), lambda n: (0, 0)),
            pl.BlockSpec((1, Cr), lambda n: (0, 0)),
            pl.BlockSpec((Cr, Cr), lambda n: (0, 0)),
            pl.BlockSpec((1, Cr), lambda n: (0, 0)),
            pl.BlockSpec((Cr, 2 * KP), lambda n: (0, 0)),
            pl.BlockSpec((1, KP), lambda n: (0, 0)),
            pl.BlockSpec((1, KP), lambda n: (0, 0)),
            pl.BlockSpec((1, KP), lambda n: (0, 0)),
        ],
        out_specs=[pl.BlockSpec((1, HW, KP), lambda n: (n, 0, 0)),
                   pl.BlockSpec((1, HW, CP), lambda n: (n, 0, 0))],
        compiler_params=pltpu.CompilerParams(dimension_semantics=("parallel",)),
    )(x, cr['w'].astype(jnp.bfloat16), vec(cr['b']),
      wn['w1'].astype(jnp.bfloat16), vec(wn['s1']), vec(wn['t1']),
      wn['w2'].astype(jnp.bfloat16), vec(wn['t2']),
      hm['paw'], hm['psq'], hm['pa'], hm['an'])
    dhyp = dhyp[..., :Cr]
    return logits.reshape(N, Hl, Wl, KP), dhyp.reshape(N, Hl, Wl, Cr)


# ----------------------------------------------------------------------------
# Plain-JAX glue: bilinear resize (align_corners=True)
# ----------------------------------------------------------------------------
def bilinear_align_corners(x_nhwc, out_h, out_w):
    N, H, W, C = x_nhwc.shape

    def coords(out_s, in_s):
        if out_s == 1 or in_s == 1:
            z = jnp.zeros((out_s,), jnp.int32)
            return z, z, jnp.zeros((out_s,), jnp.float32)
        pos = jnp.arange(out_s, dtype=jnp.float32) * ((in_s - 1) / (out_s - 1))
        i0 = jnp.floor(pos).astype(jnp.int32)
        i1 = jnp.minimum(i0 + 1, in_s - 1)
        return i0, i1, pos - i0.astype(jnp.float32)

    h0, h1, wh = coords(out_h, H)
    w0, w1, ww = coords(out_w, W)
    top = (x_nhwc[:, h0, :, :] * (1.0 - wh)[None, :, None, None]
           + x_nhwc[:, h1, :, :] * wh[None, :, None, None])
    out = (top[:, :, w0, :] * (1.0 - ww)[None, None, :, None]
           + top[:, :, w1, :] * ww[None, None, :, None])
    return out


# ----------------------------------------------------------------------------
# Deterministic parameter construction (module __init__ shapes)
# ----------------------------------------------------------------------------
class ParamGen:
    def __init__(self, seed=0):
        self._key = jax.random.PRNGKey(seed)

    def normal(self, shape, std=0.02):
        self._key, k = jax.random.split(self._key)
        return std * jax.random.normal(k, shape, dtype=jnp.float32)


def bn_affine(c, eps=1e-5):
    # eval-mode BN with default init (gamma=1, beta=0, mean=0, var=1)
    gamma = jnp.ones((c,), jnp.float32)
    beta = jnp.zeros((c,), jnp.float32)
    mean = jnp.zeros((c,), jnp.float32)
    var = jnp.ones((c,), jnp.float32)
    scale = gamma / jnp.sqrt(var + eps)
    return scale, beta - mean * scale


def build_params(inplanes, dilation_series, num_classes, reduced_channels, hfr, seed=0):
    pg = ParamGen(seed)
    OUT = 512
    p = {}

    branches = []
    for d in dilation_series:
        if d == 1:
            s, t = bn_affine(OUT)
            branches.append(dict(kind='conv1x1',
                                 w=pg.normal((inplanes, OUT), (2.0 / inplanes) ** 0.5),
                                 scale=s, bias=t))
        else:
            sd, td = bn_affine(inplanes)
            sp_, tp_ = bn_affine(OUT)
            branches.append(dict(kind='sepconv', dilation=int(d),
                                 dw_w=pg.normal((9, inplanes), (2.0 / 9.0) ** 0.5),
                                 dw_scale=sd, dw_bias=td,
                                 pw_w=pg.normal((inplanes, OUT), (2.0 / inplanes) ** 0.5),
                                 pw_scale=sp_, pw_bias=tp_))
    p['branches'] = branches

    s, t = bn_affine(OUT)
    p['global'] = dict(w=pg.normal((inplanes, OUT), (2.0 / inplanes) ** 0.5),
                       scale=s, bias=t)

    bt_in = OUT * (len(dilation_series) + 1)
    s, t = bn_affine(OUT)
    p['bottleneck'] = dict(w=pg.normal((9, bt_in, OUT), (2.0 / (9 * bt_in)) ** 0.5),
                           scale=s, bias=t)

    s, t = bn_affine(48)
    p['shortcut'] = dict(w=pg.normal((256, 48), (2.0 / 256.0) ** 0.5), scale=s, bias=t)

    dec = []
    cin = OUT + 48  # 560
    for _ in range(2):
        sd, td = bn_affine(cin)
        sp_, tp_ = bn_affine(OUT)
        dec.append(dict(kind='sepconv', dilation=1,
                        dw_w=pg.normal((9, cin), (2.0 / 9.0) ** 0.5),
                        dw_scale=sd, dw_bias=td,
                        pw_w=pg.normal((cin, OUT), (2.0 / cin) ** 0.5),
                        pw_scale=sp_, pw_bias=tp_))
        cin = OUT
    p['decoder'] = dec

    p['conv_reduce'] = dict(w=pg.normal((OUT, reduced_channels), (2.0 / OUT) ** 0.5),
                            b=pg.normal((reduced_channels,), 0.01))

    if hfr:
        s_bn, t_bn = bn_affine(reduced_channels)
        w1 = pg.normal((reduced_channels, reduced_channels), (1.0 / reduced_channels) ** 0.5)
        b1 = pg.normal((reduced_channels,), 0.01)
        w2 = pg.normal((reduced_channels, reduced_channels), (1.0 / reduced_channels) ** 0.5)
        b2 = pg.normal((reduced_channels,), 0.01)
        # Linear + BN1d folded into (scale, bias) of the fused tail kernel.
        p['wn_mlp'] = dict(w1=w1, s1=s_bn, t1=b1 * s_bn + t_bn, w2=w2, t2=b2)
    else:
        p['wn_mlp'] = None

    # TODO(synk): HyperMLR source not provided; standard Poincare-ball MLR
    # (Ganea et al.) parameterization with per-class tangents a_k / offsets p_k.
    KP = _round_up(max(num_classes, 1), 128)       # lane-dense padded class count
    a = pg.normal((num_classes, reduced_channels), 0.05)
    pp = pg.normal((num_classes, reduced_channels), 0.05)
    pw = jnp.zeros((reduced_channels, KP), jnp.float32).at[:, :num_classes].set(pp.T)
    aw = jnp.zeros((reduced_channels, KP), jnp.float32).at[:, :num_classes].set(a.T)
    p['conv_seg'] = dict(paw=jnp.concatenate([pw, aw], axis=1),      # (C, 2*KP)
                         psq=jnp.sum(pw * pw, axis=0, keepdims=True),
                         pa=jnp.sum(pw * aw, axis=0, keepdims=True),
                         an=jnp.sqrt(jnp.sum(aw * aw, axis=0, keepdims=True)),
                         num_classes=num_classes, KP=KP)
    return p


# ----------------------------------------------------------------------------
# Forward pass (mirrors DepthwiseSeparableASPP_Hyper.forward, size=None)
# ----------------------------------------------------------------------------
def forward(params, x_out_nchw, x_low_nchw, curvature=CURVATURE):
    x = jnp.transpose(x_out_nchw.astype(jnp.float32), (0, 2, 3, 1))     # NHWC
    low = jnp.transpose(x_low_nchw.astype(jnp.float32), (0, 2, 3, 1))
    N, H, W, _ = x.shape
    Hl, Wl = low.shape[1], low.shape[2]

    # ---- ASPP parallel branches ----
    aspp = []
    for br in params['branches']:
        if br['kind'] == 'conv1x1':
            aspp.append(conv1x1_affine(x, br['w'], br['scale'], br['bias'], True))
        else:
            aspp.append(sepconv_fused(x, br))       # fused dw+pw, single kernel

    # ---- global branch: avg pool -> 1x1 conv -> BN -> ReLU -> upsample ----
    gb = params['global']
    g = jnp.mean(x, axis=(1, 2))                    # tiny reduction, plain JAX
    g = matmul_affine(g, gb['w'], gb['scale'], gb['bias'], True)
    # TODO(synk): the broadcast+concat could be folded into the bottleneck as a
    # per-batch bias (with border-tap masking) to skip this HBM materialization.
    g = jnp.broadcast_to(g[:, None, None, :], (N, H, W, g.shape[-1]))  # 1x1 -> HxW

    aspp.append(g)
    a = jnp.concatenate(aspp, axis=-1)

    # ---- bottleneck: 3x3 conv + BN + ReLU (resident weights, bf16 input) ----
    a = conv3x3_bn_relu(a, params['bottleneck'])
    a = bilinear_align_corners(a, Hl, Wl)

    # ---- shortcut + decoder (two fused depthwise-separable blocks) ----
    sc = params['shortcut']
    s = conv1x1_affine(low, sc['w'], sc['scale'], sc['bias'], True)
    feats = jnp.concatenate([a, s], axis=-1)
    for blk in params['decoder']:
        feats = sepconv_fused(feats, blk)
    # Dropout2d(0.1): identity in eval mode

    # ---- fused tail: conv_reduce -> wn_mlp -> normalize -> expmap0 -> HyperMLR
    # TODO(synk): PyTorch casts to float64 for conv_seg; f64 unsupported in TPU
    # Pallas -> computed in f32.
    logits_p, d_hyp = tail_fused(feats, params['conv_reduce'], params['wn_mlp'],
                                 params['conv_seg'], curvature)
    out = logits_p[..., :params['conv_seg']['num_classes']]

    # back to NCHW (PyTorch convention)
    return jnp.transpose(out, (0, 3, 1, 2)), jnp.transpose(d_hyp, (0, 3, 1, 2))


# ----------------------------------------------------------------------------
if __name__ == "__main__":
    N = 2
    INPLANES = 64
    H = W = 8          # x['out'] spatial
    HL = WL = 16       # x['low'] spatial (256 channels, hardcoded in the module)
    NUM_CLASSES = 5
    REDUCED = 16
    DILATION_SERIES = [1, 6]   # padding_series mirrors it (unused by forward)

    params = build_params(INPLANES, DILATION_SERIES, NUM_CLASSES, REDUCED,
                          hfr=True, seed=0)

    key = jax.random.PRNGKey(0)
    k1, k2 = jax.random.split(key)
    x_out = jax.random.normal(k1, (N, INPLANES, H, W), dtype=jnp.float32)
    x_low = jax.random.normal(k2, (N, 256, HL, WL), dtype=jnp.float32)

    out, decoder_out = forward(params, x_out, x_low)
    out = jax.block_until_ready(out)
    decoder_out = jax.block_until_ready(decoder_out)

    assert out.shape == (N, NUM_CLASSES, HL, WL), out.shape
    assert decoder_out.shape == (N, REDUCED, HL, WL), decoder_out.shape
    assert bool(jnp.all(jnp.isfinite(out))) and bool(jnp.all(jnp.isfinite(decoder_out)))
    print("KERNEL_OK")
</pallas_src>

<mosaic_0001>
module attributes {stable_mosaic.version = 11 : i64} {
  func.func @_mm_affine_kernel(%arg0: i32, %arg1: i32, %arg2: memref<128x64xf32, #tpu.memory_space<vmem>>, %arg3: memref<64x512xbf16, #tpu.memory_space<vmem>>, %arg4: memref<1x512xf32, #tpu.memory_space<vmem>>, %arg5: memref<1x512xf32, #tpu.memory_space<vmem>>, %arg6: memref<128x512xf32, #tpu.memory_space<vmem>>) attributes {dimension_semantics = [#tpu.dimension_semantics<parallel>, #tpu.dimension_semantics<parallel>], iteration_bounds = array<i64: 1, 1>, scalar_prefetch = 0 : i64, scratch_operands = 0 : i64, tpu.core_type = #tpu.core_type<tc>, window_params = [{transform_indices = @transform_0, window_bounds = array<i64: 128, 64>}, {transform_indices = @transform_1, window_bounds = array<i64: 64, 512>}, {transform_indices = @transform_2, window_bounds = array<i64: 1, 512>}, {transform_indices = @transform_3, window_bounds = array<i64: 1, 512>}, {transform_indices = @transform_4, window_bounds = array<i64: 128, 512>}]} {
    %c0 = arith.constant 0 : index
    %c0_0 = arith.constant 0 : index
    %0 = vector.load %arg2[%c0, %c0_0] : memref<128x64xf32, #tpu.memory_space<vmem>>, vector<128x64xf32>
    %1 = arith.truncf %0 : vector<128x64xf32> to vector<128x64xbf16>
    %c0_1 = arith.constant 0 : index
    %c0_2 = arith.constant 0 : index
    %2 = vector.load %arg3[%c0_1, %c0_2] : memref<64x512xbf16, #tpu.memory_space<vmem>>, vector<64x512xbf16>
    %cst = arith.constant dense<0.000000e+00> : vector<128x512xf32>
    %3 = tpu.matmul %1, %2, %cst {dimension_numbers = #tpu.dot_dimension_numbers<[1], [0], [0], [1], [0, 0, 1, 1], [], []>} : vector<128x64xbf16>, vector<64x512xbf16>, vector<128x512xf32> -> vector<128x512xf32>
    %c0_3 = arith.constant 0 : index
    %c0_4 = arith.constant 0 : index
    %4 = vector.load %arg4[%c0_3, %c0_4] : memref<1x512xf32, #tpu.memory_space<vmem>>, vector<1x512xf32>
    %5 = vector.broadcast %4 : vector<1x512xf32> to vector<128x512xf32>
    %6 = arith.mulf %3, %5 : vector<128x512xf32>
    %c0_5 = arith.constant 0 : index
    %c0_6 = arith.constant 0 : index
    %7 = vector.load %arg5[%c0_5, %c0_6] : memref<1x512xf32, #tpu.memory_space<vmem>>, vector<1x512xf32>
    %8 = vector.broadcast %7 : vector<1x512xf32> to vector<128x512xf32>
    %9 = arith.addf %6, %8 : vector<128x512xf32>
    %cst_7 = arith.constant 0.000000e+00 : f32
    %10 = vector.broadcast %cst_7 : f32 to vector<128x512xf32>
    %11 = arith.maximumf %9, %10 : vector<128x512xf32>
    %c0_8 = arith.constant 0 : index
    %c0_9 = arith.constant 0 : index
    %12 = vector.load %arg6[%c0_8, %c0_9] : memref<128x512xf32, #tpu.memory_space<vmem>>, vector<128x512xf32>
    tpu.vector_store %arg6[%c0_8, %c0_9], %11 {strides = array<i32>} : memref<128x512xf32, #tpu.memory_space<vmem>>, vector<128x512xf32>,
    return
  }
  func.func @transform_0(%arg0: i32, %arg1: i32) -> (i32, i32) {
    %c0_i32 = arith.constant 0 : i32
    %c0_i32_0 = arith.constant 0 : i32
    return %arg0, %c0_i32 : i32, i32
  }
  func.func @transform_1(%arg0: i32, %arg1: i32) -> (i32, i32) {
    %c0_i32 = arith.constant 0 : i32
    %c0_i32_0 = arith.constant 0 : i32
    return %c0_i32, %arg1 : i32, i32
  }
  func.func @transform_2(%arg0: i32, %arg1: i32) -> (i32, i32) {
    %c0_i32 = arith.constant 0 : i32
    %c0_i32_0 = arith.constant 0 : i32
    return %c0_i32, %arg1 : i32, i32
  }
  func.func @transform_3(%arg0: i32, %arg1: i32) -> (i32, i32) {
    %c0_i32 = arith.constant 0 : i32
    %c0_i32_0 = arith.constant 0 : i32
    return %c0_i32, %arg1 : i32, i32
  }
  func.func @transform_4(%arg0: i32, %arg1: i32) -> (i32, i32) {
    %c0_i32 = arith.constant 0 : i32
    return %arg0, %arg1 : i32, i32
  }
}

</mosaic_0001>

<bundles_post_ra>
// kernel: tpu_custom_call.1
= control target key start
LH: loop header
LB: loop body
LE: loop exit
PB: predicated region body
PF: predicated region fallthrough
CT: control target
= control target key end

     0   :  { %v790_v2 = vmov 0   ;;  %vm139_vm0 = vcmask 523264   ;;  %s1109_s0 = inlined_call_operand.vmem [shape: f32[128,64], index: 0, kind: input, shape index: {}]   ;;  %s1110_s1 = inlined_call_operand.vmem [shape: bf16[64,512], index: 1, kind: input, shape index: {}]   ;;  %s1111_s2 = inlined_call_operand.vmem [shape: f32[1,512], index: 2, kind: input, shape index: {}]   ;;  %s1112_s3 = inlined_call_operand.vmem [shape: f32[1,512], index: 3, kind: input, shape index: {}]   ;;  %s1113_s4 = inlined_call_operand.hbm [shape: f32[128,512], index: 4, kind: output, shape index: {}]  }
   0x1   :  { %v742_v0 = vld [vmem:[%s1110_s1 + $0x4] ss:$16 sps:$4 sm:$0xff]   ;;  %v744_v1 = vld [vmem:[%s1110_s1 + $0xc] ss:$16 sps:$4 sm:$0xff]   ;;  %196 = vmatprep.mubr.bf16.mxu0 %v790_v2  ;;  %309 = vmatprep.mubr.bf16.mxu1 %v790_v2  ;;  %v746_v3 = vld [vmem:[%s1110_s1] ss:$16 sps:$4 sm:$0xff]  }
   0x2   :  { %164 = vmatprep.subr.bf16.mxu0 %v742_v0  ;;  %v747_v4 = vld [vmem:[%s1110_s1 + $0x8] ss:$16 sps:$4 sm:$0xff]   ;;  %277 = vmatprep.subr.bf16.mxu1 %v744_v1  ;;  %v748_v5 = vld [vmem:[%s1110_s1 + $0x24] ss:$16 sps:$4 sm:$0xff]   ;;  %v750_v6 = vld [vmem:[%s1110_s1 + $0x2c] ss:$16 sps:$4 sm:$0xff]  }
   0x3   :  { %165 = vmatpush1.bf16.msra.mxu0 %v746_v3  ;;  %278 = vmatpush1.bf16.msra.mxu1 %v747_v4  ;;  %v752_v7 = vld [vmem:[%s1110_s1 + $0x20] ss:$16 sps:$4 sm:$0xff]   ;;  %v753_v8 = vld [vmem:[%s1110_s1 + $0x28] ss:$16 sps:$4 sm:$0xff]   ;;  %v754_v9 = vld [vmem:[%s1110_s1 + $0x44] ss:$16 sps:$4 sm:$0xff]  }
   0x4   :  { %166 = vmatprep.subr.bf16.mxu0 %v748_v5  ;;  %279 = vmatprep.subr.bf16.mxu1 %v750_v6  ;;  %v756_v10 = vld [vmem:[%s1110_s1 + $0x4c] ss:$16 sps:$4 sm:$0xff]   ;;  %v758_v11 = vld [vmem:[%s1110_s1 + $0x40] ss:$16 sps:$4 sm:$0xff]   ;;  %v759_v12 = vld [vmem:[%s1110_s1 + $0x48] ss:$16 sps:$4 sm:$0xff]  }
   0x5   :  { %v760_v13 = vld [vmem:[%s1110_s1 + $0x64] ss:$16 sps:$4 sm:$0xff]   ;;  %v762_v14 = vld [vmem:[%s1110_s1 + $0x6c] ss:$16 sps:$4 sm:$0xff]   ;;  %v764_v15 = vld [vmem:[%s1110_s1 + $0x60] ss:$16 sps:$4 sm:$0xff]  }
   0x6   :  { %v765_v16 = vld [vmem:[%s1110_s1 + $0x68] ss:$16 sps:$4 sm:$0xff]   ;;  %v19_v17 = vld [vmem:[%s1109_s0] sm:$0xff] }
   0x7   :  { %167 = vmatpush1.bf16.msra.mxu0 %v752_v7  ;;  %280 = vmatpush1.bf16.msra.mxu1 %v753_v8  ;;  %v20_v18 = vld [vmem:[%s1109_s0 + $0x8] sm:$0xff] }
   0x8   :  { %168 = vmatprep.subr.bf16.mxu0 %v754_v9  ;;  %281 = vmatprep.subr.bf16.mxu1 %v756_v10  ;;  %v35_v19 = vpack.c.bf16 %v20_v18, %v19_v17 }
   0xb   :  { %169 = vmatpush1.bf16.msra.mxu0 %v758_v11  ;;  %282 = vmatpush1.bf16.msra.mxu1 %v759_v12 }
   0xc   :  { %170 = vmatprep.subr.bf16.mxu0 %v760_v13  ;;  %283 = vmatprep.subr.bf16.mxu1 %v762_v14 }
   0xf   :  { %171 = vmatpush1.bf16.msra.mxu0 %v764_v15  ;;  %284 = vmatpush1.bf16.msra.mxu1 %v765_v16 }
  0x10   :  { %9 = vsyncpa [#allocation3], 0  ;;  %v21_v20 = vld [vmem:[%s1109_s0 + $0x10] sm:$0xff]  ;;  %v22_v21 = vld [vmem:[%s1109_s0 + $0x18] sm:$0xff]  ;;  %v392_v41 = vlaneseq }
  0x11   :  { %v36_v22 = vpack.c.bf16 %v22_v21, %v21_v20  ;;  %v23_v23 = vld [vmem:[%s1109_s0 + $0x20] sm:$0xff]  ;;  %v24_v24 = vld [vmem:[%s1109_s0 + $0x28] sm:$0xff]  ;;  %v25_v26 = vld [vmem:[%s1109_s0 + $0x30] sm:$0xff] }
  0x12   :  { %722 = vmatmul.mubr.msk.bf16.vlgmr.msra.gmra.mrb[0].mxu0 %vm139_vm0, %v35_v19  ;;  %730 = vmatmul.mubr.msk.bf16.vlgmr.msra.gmra.mrb[0].mxu1 %vm139_vm0, %v35_v19  ;;  %v37_v25 = vpack.c.bf16 %v24_v24, %v23_v23  ;;  %v26_v27 = vld [vmem:[%s1109_s0 + $0x38] sm:$0xff]  ;;  %v27_v29 = vld [vmem:[%s1109_s0 + $0x40] sm:$0xff]  ;;  %v28_v30 = vld [vmem:[%s1109_s0 + $0x48] sm:$0xff]  ;;  %v393_v42 = vshrl.u32 %v392_v41, 7 }
  0x13   :  { %206 = vmatprep.mubr.bf16.mxu0 %v790_v2  ;;  %319 = vmatprep.mubr.bf16.mxu1 %v790_v2  ;;  %v38_v28 = vpack.c.bf16 %v26_v27, %v25_v26  ;;  %v39_v31 = vpack.c.bf16 %v28_v30, %v27_v29  ;;  %v29_v32 = vld [vmem:[%s1109_s0 + $0x50] sm:$0xff]  ;;  %v30_v33 = vld [vmem:[%s1109_s0 + $0x58] sm:$0xff]  ;;  %v31_v35 = vld [vmem:[%s1109_s0 + $0x60] sm:$0xff] }
  0x14   :  { %v40_v34 = vpack.c.bf16 %v30_v33, %v29_v32  ;;  %v32_v36 = vld [vmem:[%s1109_s0 + $0x68] sm:$0xff]  ;;  %v33_v38 = vld [vmem:[%s1109_s0 + $0x70] sm:$0xff]  ;;  %v34_v39 = vld [vmem:[%s1109_s0 + $0x78] sm:$0xff]  ;;  %v394_v43 = vsub.s32 0, %v393_v42  ;;  %v402_v44 = vsub.s32 2, %v393_v42  ;;  %v398_v46 = vsub.s32 1, %v393_v42 }
  0x15   :  { %v41_v37 = vpack.c.bf16 %v32_v36, %v31_v35  ;;  %v42_v40 = vpack.c.bf16 %v34_v39, %v33_v38  ;;  %v390_v45 = vld [vmem:[%s1111_s2] sm:$0xf]  ;;  %v406_v47 = vsub.s32 3, %v393_v42  ;;  %s791_s0 = smov [#allocation2]  }
  0x16   :  { %v476_v48 = vld [vmem:[%s1112_s3] sm:$0xf]  ;;  %v953_v49 = vrot.slane %v390_v45, %v394_v43  ;;  %v955_v50 = vrot.slane %v390_v45, %v402_v44  ;;  %v957_v51 = vrot.slane %v390_v45, %v398_v46  ;;  %s695_s2 = sshll.u32 %s791_s0, 4  ;;  %s696_s2 = int_to_ptr.vmem [resolvable:$true] %s695_s2 }
  0x17   :  { %v959_v52 = vrot.slane %v390_v45, %v406_v47  ;;  %v961_v53 = vrot.slane %v476_v48, %v394_v43  ;;  %v963_v54 = vrot.slane %v476_v48, %v402_v44  ;;  %v965_v57 = vrot.slane %v476_v48, %v398_v46  ;;  %s766_s3 = scalar_lea.vmem %s696_s2, 8192  ;;  %p771_p1 = scmp.lt.s32.totalorder %s696_s2, %s696_s2 }
  0x18   :  { %v967_v58 = vrot.slane %v476_v48, %v406_v47  ;;  %p767_p0 = scmp.ne.s32.totalorder %s696_s2, %s766_s3  ;;  %p772_p2 = scmp.lt.s32.totalorder %s766_s3, %s766_s3 }
  0x1a   :  { %723 = vmatmul.mubr.msk.bf16.gmra.mrb[4].mxu0 %vm139_vm0, %v36_v22  ;;  %731 = vmatmul.mubr.msk.bf16.gmra.mrb[4].mxu1 %vm139_vm0, %v36_v22  ;;  %p773_p3 = por %p772_p2, %p771_p1 }
  0x1b   :  { %216 = vmatprep.mubr.bf16.mxu0 %v790_v2  ;;  %329 = vmatprep.mubr.bf16.mxu1 %v790_v2 }
  0x1c   :  { %p774_p4 = pnand %p773_p3, %p767_p0 }
  0x22   :  { %724 = vmatmul.mubr.msk.bf16.gmra.mrb[8].mxu0 %vm139_vm0, %v37_v25  ;;  %732 = vmatmul.mubr.msk.bf16.gmra.mrb[8].mxu1 %vm139_vm0, %v37_v25 }
  0x23   :  { %226 = vmatprep.mubr.bf16.mxu0 %v790_v2  ;;  %339 = vmatprep.mubr.bf16.mxu1 %v790_v2 }
  0x2a   :  { %725 = vmatmul.mubr.msk.bf16.gmra.mrb[12].mxu0 %vm139_vm0, %v38_v28  ;;  %733 = vmatmul.mubr.msk.bf16.gmra.mrb[12].mxu1 %vm139_vm0, %v38_v28 }
  0x2b   :  { %236 = vmatprep.mubr.bf16.mxu0 %v790_v2  ;;  %349 = vmatprep.mubr.bf16.mxu1 %v790_v2 }
  0x32   :  { %726 = vmatmul.mubr.msk.bf16.gmra.mrb[16].mxu0 %vm139_vm0, %v39_v31  ;;  %734 = vmatmul.mubr.msk.bf16.gmra.mrb[16].mxu1 %vm139_vm0, %v39_v31 }
  0x33   :  { %246 = vmatprep.mubr.bf16.mxu0 %v790_v2  ;;  %359 = vmatprep.mubr.bf16.mxu1 %v790_v2 }
  0x3a   :  { %727 = vmatmul.mubr.msk.bf16.gmra.mrb[20].mxu0 %vm139_vm0, %v40_v34  ;;  %735 = vmatmul.mubr.msk.bf16.gmra.mrb[20].mxu1 %vm139_vm0, %v40_v34 }
  0x3b   :  { %256 = vmatprep.mubr.bf16.mxu0 %v790_v2  ;;  %369 = vmatprep.mubr.bf16.mxu1 %v790_v2 }
  0x42   :  { %728 = vmatmul.mubr.msk.bf16.gmra.mrb[24].mxu0 %vm139_vm0, %v41_v37  ;;  %736 = vmatmul.mubr.msk.bf16.gmra.mrb[24].mxu1 %vm139_vm0, %v41_v37 }
  0x43   :  { %266 = vmatprep.mubr.bf16.mxu0 %v790_v2  ;;  %379 = vmatprep.mubr.bf16.mxu1 %v790_v2 }
  0x4a   :  { %729 = vmatmul.mubr.msk.bf16.gmra.mrb[28].mxu0 %vm139_vm0, %v42_v40  ;;  %737 = vmatmul.mubr.msk.bf16.gmra.mrb[28].mxu1 %vm139_vm0, %v42_v40 }
  0xe5   :  { %v198_v55 = vpop.f32.mrb[0].mxu0  ;;  %v311_v56 = vpop.f32.mrb[0].mxu1 }
  0xe6   :  { %v412_v59 = vmul.f32 %v953_v49, %v198_v55  ;;  %v414_v60 = vmul.f32 %v955_v50, %v311_v56  ;;  %v200_v61 = vpop.f32.mrb[1].mxu0  ;;  %v313_v62 = vpop.f32.mrb[1].mxu1 }
  0xe7   :  { %v413_v63 = vmul.f32 %v957_v51, %v200_v61  ;;  %v415_v0 = vmul.f32 %v959_v52, %v313_v62  ;;  %v202_v1 = vpop.f32.mrb[2].mxu0  ;;  %v315_v2 = vpop.f32.mrb[2].mxu1 }
  0xe8   :  { %v498_v3 = vadd.f32 %v961_v53, %v412_v59  ;;  %v500_v4 = vadd.f32 %v963_v54, %v414_v60  ;;  %v416_v5 = vmul.f32 %v953_v49, %v202_v1  ;;  %v418_v6 = vmul.f32 %v955_v50, %v315_v2  ;;  %v204_v7 = vpop.f32.mrb[3].mxu0  ;;  %v317_v8 = vpop.f32.mrb[3].mxu1 }
  0xe9   :  { %v499_v9 = vadd.f32 %v965_v57, %v413_v63  ;;  %v501_v10 = vadd.f32 %v967_v58, %v415_v0  ;;  %v417_v11 = vmul.f32 %v957_v51, %v204_v7  ;;  %v419_v12 = vmul.f32 %v959_v52, %v317_v8 }
  0xea   :  { %v562_v13 = vmax.f32 %v498_v3, 0.0  ;;  %v564_v14 = vmax.f32 %v500_v4, 0.0  ;;  %v502_v15 = vadd.f32 %v961_v53, %v416_v5  ;;  %v504_v16 = vadd.f32 %v963_v54, %v418_v6 }
  0xeb   :  { %v563_v17 = vmax.f32 %v499_v9, 0.0  ;;  %v565_v18 = vmax.f32 %v501_v10, 0.0  ;;  %v503_v19 = vadd.f32 %v965_v57, %v417_v11  ;;  %v505_v20 = vadd.f32 %v967_v58, %v419_v12 }
  0xec   :  { %626 = vst [vmem:[#allocation2] sm:$0xff] %v562_v13  ;;  %628 = vst [vmem:[#allocation2 + $0x10] sm:$0xff] %v564_v14  ;;  %v566_v21 = vmax.f32 %v502_v15, 0.0  ;;  %v568_v22 = vmax.f32 %v504_v16, 0.0 }
  0xed   :  { %627 = vst [vmem:[#allocation2 + $0x8] sm:$0xff] %v563_v17  ;;  %629 = vst [vmem:[#allocation2 + $0x18] sm:$0xff] %v565_v18  ;;  %v567_v23 = vmax.f32 %v503_v19, 0.0  ;;  %v569_v24 = vmax.f32 %v505_v20, 0.0  ;;  %v208_v25 = vpop.f32.mrb[4].mxu0  ;;  %v321_v26 = vpop.f32.mrb[4].mxu1 }
  0xee   :  { %630 = vst [vmem:[#allocation2 + $0x20] sm:$0xff] %v566_v21  ;;  %632 = vst [vmem:[#allocation2 + $0x30] sm:$0xff] %v568_v22  ;;  %v420_v27 = vmul.f32 %v953_v49, %v208_v25  ;;  %v422_v28 = vmul.f32 %v955_v50, %v321_v26  ;;  %v210_v29 = vpop.f32.mrb[5].mxu0  ;;  %v323_v30 = vpop.f32.mrb[5].mxu1 }
  0xef   :  { %631 = vst [vmem:[#allocation2 + $0x28] sm:$0xff] %v567_v23  ;;  %633 = vst [vmem:[#allocation2 + $0x38] sm:$0xff] %v569_v24  ;;  %v421_v31 = vmul.f32 %v957_v51, %v210_v29  ;;  %v423_v32 = vmul.f32 %v959_v52, %v323_v30  ;;  %v212_v33 = vpop.f32.mrb[6].mxu0  ;;  %v325_v34 = vpop.f32.mrb[6].mxu1 }
  0xf0   :  { %v506_v35 = vadd.f32 %v961_v53, %v420_v27  ;;  %v508_v36 = vadd.f32 %v963_v54, %v422_v28  ;;  %v424_v37 = vmul.f32 %v953_v49, %v212_v33  ;;  %v426_v38 = vmul.f32 %v955_v50, %v325_v34  ;;  %v214_v39 = vpop.f32.mrb[7].mxu0  ;;  %v327_v40 = vpop.f32.mrb[7].mxu1 }
  0xf1   :  { %v507_v41 = vadd.f32 %v965_v57, %v421_v31  ;;  %v509_v42 = vadd.f32 %v967_v58, %v423_v32  ;;  %v425_v43 = vmul.f32 %v957_v51, %v214_v39  ;;  %v427_v44 = vmul.f32 %v959_v52, %v327_v40 }
  0xf2   :  { %v570_v45 = vmax.f32 %v506_v35, 0.0  ;;  %v572_v46 = vmax.f32 %v508_v36, 0.0  ;;  %v510_v47 = vadd.f32 %v961_v53, %v424_v37  ;;  %v512_v48 = vadd.f32 %v963_v54, %v426_v38 }
  0xf3   :  { %v571_v55 = vmax.f32 %v507_v41, 0.0  ;;  %v573_v56 = vmax.f32 %v509_v42, 0.0  ;;  %v511_v59 = vadd.f32 %v965_v57, %v425_v43  ;;  %v513_v60 = vadd.f32 %v967_v58, %v427_v44 }
  0xf4   :  { %634 = vst [vmem:[#allocation2 + $0x40] sm:$0xff] %v570_v45  ;;  %636 = vst [vmem:[#allocation2 + $0x50] sm:$0xff] %v572_v46  ;;  %v574_v61 = vmax.f32 %v510_v47, 0.0  ;;  %v576_v62 = vmax.f32 %v512_v48, 0.0 }
  0xf5   :  { %635 = vst [vmem:[#allocation2 + $0x48] sm:$0xff] %v571_v55  ;;  %637 = vst [vmem:[#allocation2 + $0x58] sm:$0xff] %v573_v56  ;;  %v575_v63 = vmax.f32 %v511_v59, 0.0  ;;  %v577_v0 = vmax.f32 %v513_v60, 0.0  ;;  %v218_v1 = vpop.f32.mrb[8].mxu0  ;;  %v331_v2 = vpop.f32.mrb[8].mxu1 }
  0xf6   :  { %638 = vst [vmem:[#allocation2 + $0x60] sm:$0xff] %v574_v61  ;;  %640 = vst [vmem:[#allocation2 + $0x70] sm:$0xff] %v576_v62  ;;  %v428_v3 = vmul.f32 %v953_v49, %v218_v1  ;;  %v430_v4 = vmul.f32 %v955_v50, %v331_v2  ;;  %v220_v5 = vpop.f32.mrb[9].mxu0  ;;  %v333_v6 = vpop.f32.mrb[9].mxu1 }
  0xf7   :  { %639 = vst [vmem:[#allocation2 + $0x68] sm:$0xff] %v575_v63  ;;  %641 = vst [vmem:[#allocation2 + $0x78] sm:$0xff] %v577_v0  ;;  %v429_v7 = vmul.f32 %v957_v51, %v220_v5  ;;  %v431_v8 = vmul.f32 %v959_v52, %v333_v6  ;;  %v222_v9 = vpop.f32.mrb[10].mxu0  ;;  %v335_v10 = vpop.f32.mrb[10].mxu1 }
  0xf8   :  { %v514_v11 = vadd.f32 %v961_v53, %v428_v3  ;;  %v516_v12 = vadd.f32 %v963_v54, %v430_v4  ;;  %v432_v13 = vmul.f32 %v953_v49, %v222_v9  ;;  %v434_v14 = vmul.f32 %v955_v50, %v335_v10  ;;  %v224_v15 = vpop.f32.mrb[11].mxu0  ;;  %v337_v16 = vpop.f32.mrb[11].mxu1 }
  0xf9   :  { %v515_v17 = vadd.f32 %v965_v57, %v429_v7  ;;  %v517_v18 = vadd.f32 %v967_v58, %v431_v8  ;;  %v433_v19 = vmul.f32 %v957_v51, %v224_v15  ;;  %v435_v20 = vmul.f32 %v959_v52, %v337_v16 }
  0xfa   :  { %v578_v21 = vmax.f32 %v514_v11, 0.0  ;;  %v580_v22 = vmax.f32 %v516_v12, 0.0  ;;  %v518_v23 = vadd.f32 %v961_v53, %v432_v13  ;;  %v520_v24 = vadd.f32 %v963_v54, %v434_v14 }
  0xfb   :  { %v579_v25 = vmax.f32 %v515_v17, 0.0  ;;  %v581_v26 = vmax.f32 %v517_v18, 0.0  ;;  %v519_v27 = vadd.f32 %v965_v57, %v433_v19  ;;  %v521_v28 = vadd.f32 %v967_v58, %v435_v20 }
  0xfc   :  { %642 = vst [vmem:[#allocation2 + $0x80] sm:$0xff] %v578_v21  ;;  %644 = vst [vmem:[#allocation2 + $0x90] sm:$0xff] %v580_v22  ;;  %v582_v29 = vmax.f32 %v518_v23, 0.0  ;;  %v584_v30 = vmax.f32 %v520_v24, 0.0 }
  0xfd   :  { %643 = vst [vmem:[#allocation2 + $0x88] sm:$0xff] %v579_v25  ;;  %645 = vst [vmem:[#allocation2 + $0x98] sm:$0xff] %v581_v26  ;;  %v583_v31 = vmax.f32 %v519_v27, 0.0  ;;  %v585_v32 = vmax.f32 %v521_v28, 0.0  ;;  %v228_v33 = vpop.f32.mrb[12].mxu0  ;;  %v341_v34 = vpop.f32.mrb[12].mxu1 }
  0xfe   :  { %646 = vst [vmem:[#allocation2 + $0xa0] sm:$0xff] %v582_v29  ;;  %648 = vst [vmem:[#allocation2 + $0xb0] sm:$0xff] %v584_v30  ;;  %v436_v35 = vmul.f32 %v953_v49, %v228_v33  ;;  %v438_v36 = vmul.f32 %v955_v50, %v341_v34  ;;  %v230_v37 = vpop.f32.mrb[13].mxu0  ;;  %v343_v38 = vpop.f32.mrb[13].mxu1 }
  0xff   :  { %647 = vst [vmem:[#allocation2 + $0xa8] sm:$0xff] %v583_v31  ;;  %649 = vst [vmem:[#allocation2 + $0xb8] sm:$0xff] %v585_v32  ;;  %v437_v39 = vmul.f32 %v957_v51, %v230_v37  ;;  %v439_v40 = vmul.f32 %v959_v52, %v343_v38  ;;  %v232_v41 = vpop.f32.mrb[14].mxu0  ;;  %v345_v42 = vpop.f32.mrb[14].mxu1 }
 0x100   :  { %v522_v43 = vadd.f32 %v961_v53, %v436_v35  ;;  %v524_v44 = vadd.f32 %v963_v54, %v438_v36  ;;  %v440_v45 = vmul.f32 %v953_v49, %v232_v41  ;;  %v442_v46 = vmul.f32 %v955_v50, %v345_v42  ;;  %v234_v47 = vpop.f32.mrb[15].mxu0  ;;  %v347_v48 = vpop.f32.mrb[15].mxu1 }
 0x101   :  { %v523_v55 = vadd.f32 %v965_v57, %v437_v39  ;;  %v525_v56 = vadd.f32 %v967_v58, %v439_v40  ;;  %v441_v59 = vmul.f32 %v957_v51, %v234_v47  ;;  %v443_v60 = vmul.f32 %v959_v52, %v347_v48 }
 0x102   :  { %v586_v61 = vmax.f32 %v522_v43, 0.0  ;;  %v588_v62 = vmax.f32 %v524_v44, 0.0  ;;  %v526_v63 = vadd.f32 %v961_v53, %v440_v45  ;;  %v528_v0 = vadd.f32 %v963_v54, %v442_v46 }
 0x103   :  { %v587_v1 = vmax.f32 %v523_v55, 0.0  ;;  %v589_v2 = vmax.f32 %v525_v56, 0.0  ;;  %v527_v3 = vadd.f32 %v965_v57, %v441_v59  ;;  %v529_v4 = vadd.f32 %v967_v58, %v443_v60 }
 0x104   :  { %650 = vst [vmem:[#allocation2 + $0xc0] sm:$0xff] %v586_v61  ;;  %652 = vst [vmem:[#allocation2 + $0xd0] sm:$0xff] %v588_v62  ;;  %v590_v5 = vmax.f32 %v526_v63, 0.0  ;;  %v592_v6 = vmax.f32 %v528_v0, 0.0 }
 0x105   :  { %651 = vst [vmem:[#allocation2 + $0xc8] sm:$0xff] %v587_v1  ;;  %653 = vst [vmem:[#allocation2 + $0xd8] sm:$0xff] %v589_v2  ;;  %v591_v7 = vmax.f32 %v527_v3, 0.0  ;;  %v593_v8 = vmax.f32 %v529_v4, 0.0  ;;  %v238_v9 = vpop.f32.mrb[16].mxu0  ;;  %v351_v10 = vpop.f32.mrb[16].mxu1 }
 0x106   :  { %654 = vst [vmem:[#allocation2 + $0xe0] sm:$0xff] %v590_v5  ;;  %656 = vst [vmem:[#allocation2 + $0xf0] sm:$0xff] %v592_v6  ;;  %v444_v11 = vmul.f32 %v953_v49, %v238_v9  ;;  %v446_v12 = vmul.f32 %v955_v50, %v351_v10  ;;  %v240_v13 = vpop.f32.mrb[17].mxu0  ;;  %v353_v14 = vpop.f32.mrb[17].mxu1 }
 0x107   :  { %655 = vst [vmem:[#allocation2 + $0xe8] sm:$0xff] %v591_v7  ;;  %657 = vst [vmem:[#allocation2 + $0xf8] sm:$0xff] %v593_v8  ;;  %v445_v15 = vmul.f32 %v957_v51, %v240_v13  ;;  %v447_v16 = vmul.f32 %v959_v52, %v353_v14  ;;  %v242_v17 = vpop.f32.mrb[18].mxu0  ;;  %v355_v18 = vpop.f32.mrb[18].mxu1 }
 0x108   :  { %v530_v19 = vadd.f32 %v961_v53, %v444_v11  ;;  %v532_v20 = vadd.f32 %v963_v54, %v446_v12  ;;  %v448_v21 = vmul.f32 %v953_v49, %v242_v17  ;;  %v450_v22 = vmul.f32 %v955_v50, %v355_v18  ;;  %v244_v23 = vpop.f32.mrb[19].mxu0  ;;  %v357_v24 = vpop.f32.mrb[19].mxu1 }
 0x109   :  { %v531_v25 = vadd.f32 %v965_v57, %v445_v15  ;;  %v533_v26 = vadd.f32 %v967_v58, %v447_v16  ;;  %v449_v27 = vmul.f32 %v957_v51, %v244_v23  ;;  %v451_v28 = vmul.f32 %v959_v52, %v357_v24 }
 0x10a   :  { %v594_v29 = vmax.f32 %v530_v19, 0.0  ;;  %v596_v30 = vmax.f32 %v532_v20, 0.0  ;;  %v534_v31 = vadd.f32 %v961_v53, %v448_v21  ;;  %v536_v32 = vadd.f32 %v963_v54, %v450_v22 }
 0x10b   :  { %v595_v33 = vmax.f32 %v531_v25, 0.0  ;;  %v597_v34 = vmax.f32 %v533_v26, 0.0  ;;  %v535_v35 = vadd.f32 %v965_v57, %v449_v27  ;;  %v537_v36 = vadd.f32 %v967_v58, %v451_v28 }
 0x10c   :  { %658 = vst [vmem:[#allocation2 + $0x100] sm:$0xff] %v594_v29  ;;  %660 = vst [vmem:[#allocation2 + $0x110] sm:$0xff] %v596_v30  ;;  %v598_v37 = vmax.f32 %v534_v31, 0.0  ;;  %v600_v38 = vmax.f32 %v536_v32, 0.0 }
 0x10d   :  { %659 = vst [vmem:[#allocation2 + $0x108] sm:$0xff] %v595_v33  ;;  %661 = vst [vmem:[#allocation2 + $0x118] sm:$0xff] %v597_v34  ;;  %v599_v39 = vmax.f32 %v535_v35, 0.0  ;;  %v601_v40 = vmax.f32 %v537_v36, 0.0  ;;  %v248_v41 = vpop.f32.mrb[20].mxu0  ;;  %v361_v42 = vpop.f32.mrb[20].mxu1 }
 0x10e   :  { %662 = vst [vmem:[#allocation2 + $0x120] sm:$0xff] %v598_v37  ;;  %664 = vst [vmem:[#allocation2 + $0x130] sm:$0xff] %v600_v38  ;;  %v452_v43 = vmul.f32 %v953_v49, %v248_v41  ;;  %v454_v44 = vmul.f32 %v955_v50, %v361_v42  ;;  %v250_v45 = vpop.f32.mrb[21].mxu0  ;;  %v363_v46 = vpop.f32.mrb[21].mxu1 }
 0x10f   :  { %663 = vst [vmem:[#allocation2 + $0x128] sm:$0xff] %v599_v39  ;;  %665 = vst [vmem:[#allocation2 + $0x138] sm:$0xff] %v601_v40  ;;  %v453_v47 = vmul.f32 %v957_v51, %v250_v45  ;;  %v455_v48 = vmul.f32 %v959_v52, %v363_v46  ;;  %v252_v55 = vpop.f32.mrb[22].mxu0  ;;  %v365_v56 = vpop.f32.mrb[22].mxu1 }
 0x110   :  { %v538_v59 = vadd.f32 %v961_v53, %v452_v43  ;;  %v540_v60 = vadd.f32 %v963_v54, %v454_v44  ;;  %v456_v61 = vmul.f32 %v953_v49, %v252_v55  ;;  %v458_v62 = vmul.f32 %v955_v50, %v365_v56  ;;  %v254_v63 = vpop.f32.mrb[23].mxu0  ;;  %v367_v0 = vpop.f32.mrb[23].mxu1 }
 0x111   :  { %v539_v1 = vadd.f32 %v965_v57, %v453_v47  ;;  %v541_v2 = vadd.f32 %v967_v58, %v455_v48  ;;  %v457_v3 = vmul.f32 %v957_v51, %v254_v63  ;;  %v459_v4 = vmul.f32 %v959_v52, %v367_v0 }
 0x112   :  { %v602_v5 = vmax.f32 %v538_v59, 0.0  ;;  %v604_v6 = vmax.f32 %v540_v60, 0.0  ;;  %v542_v7 = vadd.f32 %v961_v53, %v456_v61  ;;  %v544_v8 = vadd.f32 %v963_v54, %v458_v62 }
 0x113   :  { %v603_v9 = vmax.f32 %v539_v1, 0.0  ;;  %v605_v10 = vmax.f32 %v541_v2, 0.0  ;;  %v543_v11 = vadd.f32 %v965_v57, %v457_v3  ;;  %v545_v12 = vadd.f32 %v967_v58, %v459_v4 }
 0x114   :  { %666 = vst [vmem:[#allocation2 + $0x140] sm:$0xff] %v602_v5  ;;  %668 = vst [vmem:[#allocation2 + $0x150] sm:$0xff] %v604_v6  ;;  %v606_v13 = vmax.f32 %v542_v7, 0.0  ;;  %v608_v14 = vmax.f32 %v544_v8, 0.0 }
 0x115   :  { %667 = vst [vmem:[#allocation2 + $0x148] sm:$0xff] %v603_v9  ;;  %669 = vst [vmem:[#allocation2 + $0x158] sm:$0xff] %v605_v10  ;;  %v607_v15 = vmax.f32 %v543_v11, 0.0  ;;  %v609_v16 = vmax.f32 %v545_v12, 0.0  ;;  %v258_v17 = vpop.f32.mrb[24].mxu0  ;;  %v371_v18 = vpop.f32.mrb[24].mxu1 }
 0x116   :  { %670 = vst [vmem:[#allocation2 + $0x160] sm:$0xff] %v606_v13  ;;  %672 = vst [vmem:[#allocation2 + $0x170] sm:$0xff] %v608_v14  ;;  %v460_v19 = vmul.f32 %v953_v49, %v258_v17  ;;  %v462_v20 = vmul.f32 %v955_v50, %v371_v18  ;;  %v260_v21 = vpop.f32.mrb[25].mxu0  ;;  %v373_v22 = vpop.f32.mrb[25].mxu1 }
 0x117   :  { %671 = vst [vmem:[#allocation2 + $0x168] sm:$0xff] %v607_v15  ;;  %673 = vst [vmem:[#allocation2 + $0x178] sm:$0xff] %v609_v16  ;;  %v461_v23 = vmul.f32 %v957_v51, %v260_v21  ;;  %v463_v24 = vmul.f32 %v959_v52, %v373_v22  ;;  %v262_v25 = vpop.f32.mrb[26].mxu0  ;;  %v375_v26 = vpop.f32.mrb[26].mxu1 }
 0x118   :  { %v546_v27 = vadd.f32 %v961_v53, %v460_v19  ;;  %v548_v28 = vadd.f32 %v963_v54, %v462_v20  ;;  %v464_v29 = vmul.f32 %v953_v49, %v262_v25  ;;  %v466_v30 = vmul.f32 %v955_v50, %v375_v26  ;;  %v264_v31 = vpop.f32.mrb[27].mxu0  ;;  %v377_v32 = vpop.f32.mrb[27].mxu1 }
 0x119   :  { %v547_v33 = vadd.f32 %v965_v57, %v461_v23  ;;  %v549_v34 = vadd.f32 %v967_v58, %v463_v24  ;;  %v465_v35 = vmul.f32 %v957_v51, %v264_v31  ;;  %v467_v36 = vmul.f32 %v959_v52, %v377_v32 }
 0x11a   :  { %v610_v37 = vmax.f32 %v546_v27, 0.0  ;;  %v612_v38 = vmax.f32 %v548_v28, 0.0  ;;  %v550_v39 = vadd.f32 %v961_v53, %v464_v29  ;;  %v552_v40 = vadd.f32 %v963_v54, %v466_v30 }
 0x11b   :  { %v611_v41 = vmax.f32 %v547_v33, 0.0  ;;  %v613_v42 = vmax.f32 %v549_v34, 0.0  ;;  %v551_v43 = vadd.f32 %v965_v57, %v465_v35  ;;  %v553_v44 = vadd.f32 %v967_v58, %v467_v36 }
 0x11c   :  { %674 = vst [vmem:[#allocation2 + $0x180] sm:$0xff] %v610_v37  ;;  %676 = vst [vmem:[#allocation2 + $0x190] sm:$0xff] %v612_v38  ;;  %v614_v45 = vmax.f32 %v550_v39, 0.0  ;;  %v616_v46 = vmax.f32 %v552_v40, 0.0 }
 0x11d   :  { %675 = vst [vmem:[#allocation2 + $0x188] sm:$0xff] %v611_v41  ;;  %677 = vst [vmem:[#allocation2 + $0x198] sm:$0xff] %v613_v42  ;;  %v615_v47 = vmax.f32 %v551_v43, 0.0  ;;  %v617_v48 = vmax.f32 %v553_v44, 0.0  ;;  %v268_v55 = vpop.f32.mrb[28].mxu0  ;;  %v381_v56 = vpop.f32.mrb[28].mxu1 }
 0x11e   :  { %678 = vst [vmem:[#allocation2 + $0x1a0] sm:$0xff] %v614_v45  ;;  %680 = vst [vmem:[#allocation2 + $0x1b0] sm:$0xff] %v616_v46  ;;  %v468_v59 = vmul.f32 %v953_v49, %v268_v55  ;;  %v470_v60 = vmul.f32 %v955_v50, %v381_v56  ;;  %v270_v61 = vpop.f32.mrb[29].mxu0  ;;  %v383_v62 = vpop.f32.mrb[29].mxu1 }
 0x11f   :  { %679 = vst [vmem:[#allocation2 + $0x1a8] sm:$0xff] %v615_v47  ;;  %681 = vst [vmem:[#allocation2 + $0x1b8] sm:$0xff] %v617_v48  ;;  %v469_v63 = vmul.f32 %v957_v51, %v270_v61  ;;  %v471_v0 = vmul.f32 %v959_v52, %v383_v62  ;;  %v272_v1 = vpop.f32.mrb[30].mxu0  ;;  %v385_v2 = vpop.f32.mrb[30].mxu1 }
 0x120   :  { %v554_v3 = vadd.f32 %v961_v53, %v468_v59  ;;  %v556_v4 = vadd.f32 %v963_v54, %v470_v60  ;;  %v472_v5 = vmul.f32 %v953_v49, %v272_v1  ;;  %v474_v6 = vmul.f32 %v955_v50, %v385_v2  ;;  %v274_v7 = vpop.f32.mrb[31].mxu0  ;;  %v387_v8 = vpop.f32.mrb[31].mxu1 }
 0x121   :  { %v555_v9 = vadd.f32 %v965_v57, %v469_v63  ;;  %v557_v10 = vadd.f32 %v967_v58, %v471_v0  ;;  %v473_v11 = vmul.f32 %v957_v51, %v274_v7  ;;  %v475_v12 = vmul.f32 %v959_v52, %v387_v8 }
 0x122   :  { %v618_v13 = vmax.f32 %v554_v3, 0.0  ;;  %v620_v14 = vmax.f32 %v556_v4, 0.0  ;;  %v558_v15 = vadd.f32 %v961_v53, %v472_v5  ;;  %v560_v49 = vadd.f32 %v963_v54, %v474_v6 }
 0x123   :  { %v619_v16 = vmax.f32 %v555_v9, 0.0  ;;  %v621_v50 = vmax.f32 %v557_v10, 0.0  ;;  %v559_v17 = vadd.f32 %v965_v57, %v473_v11  ;;  %v561_v18 = vadd.f32 %v967_v58, %v475_v12 }
 0x124   :  { %682 = vst [vmem:[#allocation2 + $0x1c0] sm:$0xff] %v618_v13  ;;  %684 = vst [vmem:[#allocation2 + $0x1d0] sm:$0xff] %v620_v14  ;;  %v622_v19 = vmax.f32 %v558_v15, 0.0  ;;  %v624_v51 = vmax.f32 %v560_v49, 0.0 }
 0x125   :  { %683 = vst [vmem:[#allocation2 + $0x1c8] sm:$0xff] %v619_v16  ;;  %685 = vst [vmem:[#allocation2 + $0x1d8] sm:$0xff] %v621_v50  ;;  %v623_v52 = vmax.f32 %v559_v17, 0.0  ;;  %v625_v20 = vmax.f32 %v561_v18, 0.0 }
 0x126   :  { %686 = vst [vmem:[#allocation2 + $0x1e0] sm:$0xff] %v622_v19  ;;  %688 = vst [vmem:[#allocation2 + $0x1f0] sm:$0xff] %v624_v51 }
 0x127   :  { %687 = vst [vmem:[#allocation2 + $0x1e8] sm:$0xff] %v623_v52  ;;  %689 = vst [vmem:[#allocation2 + $0x1f8] sm:$0xff] %v625_v20 }
 0x128   :  { %777 = shalt.err (!%p774_p4)
}
 0x129   :  { %s778_s5 = scalar_lea.hbm %s1113_s4, 8192 }
 0x12a   :  { %p779_p5 = scmp.ne.s32.totalorder %s1113_s4, %s778_s5  ;;  %p782_p6 = scmp.lt.u32.totalorder %s778_s5, %s1113_s4 }
 0x12c   :  { %p784_p7 = pnand %p782_p6, %p779_p5 }
 0x12e   :  { %787 = shalt.err (!%p784_p7)
}
 0x12f   :  { %s792_s10 = smov 512   ;;  %s793_s11 = smov 32  }
 0x130   :  { %701 = dma.vmem_to_hbm [thread:$0]  %s696_s2, 8192, %s1113_s4, [#allocation3], %s792_s10, %s792_s10, %s793_s11  }
 0x131   :  { %788 = dma.done.wait [#allocation3], 8192  }
 0x132   :  { %789 = vsyncadd [#allocation3], 4294959104 }
 0x133   :  { %705 = vsyncpa [#allocation3], 1 }

</bundles_post_ra>
